<compile_context>
chip_gen: v7x
topology: tpu7x:2x2x1
jax: 0.10.0
libtpu: 0.0.40
codegen_flags: <defaults>
</compile_context>

<pallas_src>
import functools

import jax
import jax.numpy as jnp
import numpy as np
from jax.experimental import pallas as pl
from jax.experimental.pallas import tpu as pltpu


# --------------------------------------------------------------------------
# Model constants (small, lane-dense stand-ins for the real 2048/1024 widths)
# --------------------------------------------------------------------------
FEAT_DIM = 128         # backbone output channels (stand-in for 2048)
HIDDEN = 128           # HMR head hidden width (stand-in for 1024)
NPOSE = 16 * 6         # 96: 16 MANO joints in rot6d
PATCH = 8              # backbone stem patch size
PAD = 128              # padded per-head prediction width (lane-dense)
N_ITER = 3             # iterative regression steps

HAND_DIMS = (NPOSE, 10, 3)   # pose, shape, cam   (sum = 109)
OBJ_DIMS = (3, 1, 3)         # rot, radian, cam   (sum = 7)


# --------------------------------------------------------------------------
# Pallas kernels
# --------------------------------------------------------------------------

def _stem_featvec_kernel(x_ref, w_ref, b_ref, o_ref):
    """relu(patches @ W + b), row-summed into the per-image feat_vec block.

    x_ref: (1, TILE_M, Kp) bf16 im2col patches of one image tile
    w_ref: (Kp, FEAT_DIM)  bf16
    b_ref: (1, FEAT_DIM)   f32
    o_ref: (1, 1, FEAT_DIM) f32 -- resident accumulator across the m axis
    """
    mi = pl.program_id(1)

    @pl.when(mi == 0)
    def _():
        o_ref[...] = jnp.zeros_like(o_ref)

    y = jnp.dot(x_ref[0], w_ref[...], preferred_element_type=jnp.float32)
    y = jnp.maximum(y + b_ref[...], 0.0)
    # sublane-axis reduce -> XLU slot (idle during the matmul), effectively free
    acc = jnp.sum(y, axis=0, keepdims=True)           # (1, FEAT_DIM)
    o_ref[...] += acc.reshape(1, 1, FEAT_DIM)


def _heads_kernel(xf_ref, w1a_ref, w1b_ref, w2_ref, wdec_ref,
                  b1_ref, b2_ref, bdec_ref, init_ref, out_ref):
    """Full iterative HMR regression for one head (grid axis selects head).

    state layout (128-padded): hands  [pose96 | shape10 | cam3 | 0*19]
                               object [rot3 | radian1 | cam3 | 0*121]
    Zero-padded decoder columns keep the pad lanes exactly zero.
    """
    xf = xf_ref[...]                                   # (B, FEAT_DIM)
    B = xf.shape[0]

    w1a = w1a_ref[0]                                   # (FEAT_DIM, HIDDEN)
    w1b = w1b_ref[0]                                   # (PAD, HIDDEN)
    w2 = w2_ref[0]                                     # (HIDDEN, HIDDEN)
    wdec = wdec_ref[0]                                 # (HIDDEN, PAD)
    b1 = b1_ref[0]                                     # (1, HIDDEN)
    b2 = b2_ref[0]                                     # (1, HIDDEN)
    bdec = bdec_ref[0]                                 # (1, PAD)

    # Iteration-invariant pieces hoisted out of the loop:
    #   fc1(concat(xf, state)) == xf @ W1a + state @ W1b + b1
    xf_proj = jnp.dot(xf, w1a, preferred_element_type=jnp.float32) + b1
    b2b = jnp.broadcast_to(b2, (B, HIDDEN))
    bdecb = jnp.broadcast_to(bdec, (B, PAD))

    state = jnp.broadcast_to(init_ref[0], (B, PAD))    # (B, PAD)

    for _ in range(N_ITER):                            # short fixed loop, unrolled
        h = jnp.maximum(
            xf_proj + jnp.dot(state, w1b, preferred_element_type=jnp.float32),
            0.0)
        h = jnp.maximum(
            jnp.dot(h, w2, preferred_element_type=jnp.float32) + b2b, 0.0)
        # fused decoders (pose|shape|cam concatenated along N, lane-dense 128)
        state = state + jnp.dot(h, wdec,
                                preferred_element_type=jnp.float32) + bdecb

    out_ref[0] = state


# --------------------------------------------------------------------------
# Wrappers
# --------------------------------------------------------------------------

def backbone_feat_vec(params, images_nchw, tile_m=32):
    """Fused patch-embedding stem + spatial sum -> feat_vec (B, FEAT_DIM)."""
    B, C, H, W = images_nchw.shape
    Hp, Wp = H // PATCH, W // PATCH
    HW = Hp * Wp
    Kp = PATCH * PATCH * C

    # im2col (cheap layout glue in plain JAX)
    x = jnp.transpose(images_nchw, (0, 2, 3, 1))                # NHWC
    x = x.reshape(B, Hp, PATCH, Wp, PATCH, C)
    x = jnp.transpose(x, (0, 1, 3, 2, 4, 5))
    patches = x.reshape(B, HW, Kp).astype(jnp.bfloat16)         # bf16 operands

    tile_m = min(tile_m, HW)
    assert HW % tile_m == 0
    n_m = HW // tile_m

    w = params["stem_w"].astype(jnp.bfloat16)
    b = params["stem_b"]

    feat = pl.pallas_call(
        _stem_featvec_kernel,
        out_shape=jax.ShapeDtypeStruct((B, 1, FEAT_DIM), jnp.float32),
        grid=(B, n_m),
        in_specs=[
            pl.BlockSpec((1, tile_m, Kp), lambda bi, mi: (bi, mi, 0)),
            pl.BlockSpec((Kp, FEAT_DIM), lambda bi, mi: (0, 0)),
            pl.BlockSpec((1, FEAT_DIM), lambda bi, mi: (0, 0)),
        ],
        out_specs=pl.BlockSpec((1, 1, FEAT_DIM), lambda bi, mi: (bi, 0, 0)),
        compiler_params=pltpu.CompilerParams(
            dimension_semantics=("parallel", "arbitrary"),
            vmem_limit_bytes=32 * 1024 * 1024),
    )(patches, w, b)
    return feat.reshape(B, FEAT_DIM), HW


def run_heads(params, xf):
    """All three HMR heads (r / l / object) in one pallas_call, grid over heads."""
    B = xf.shape[0]
    return pl.pallas_call(
        _heads_kernel,
        out_shape=jax.ShapeDtypeStruct((3, B, PAD), jnp.float32),
        grid=(3,),
        in_specs=[
            pl.BlockSpec((B, FEAT_DIM), lambda h: (0, 0)),              # xf
            pl.BlockSpec((1, FEAT_DIM, HIDDEN), lambda h: (h, 0, 0)),   # w1a
            pl.BlockSpec((1, PAD, HIDDEN), lambda h: (h, 0, 0)),        # w1b
            pl.BlockSpec((1, HIDDEN, HIDDEN), lambda h: (h, 0, 0)),     # w2
            pl.BlockSpec((1, HIDDEN, PAD), lambda h: (h, 0, 0)),        # wdec
            pl.BlockSpec((1, 1, HIDDEN), lambda h: (h, 0, 0)),          # b1
            pl.BlockSpec((1, 1, HIDDEN), lambda h: (h, 0, 0)),          # b2
            pl.BlockSpec((1, 1, PAD), lambda h: (h, 0, 0)),             # bdec
            pl.BlockSpec((1, 1, PAD), lambda h: (h, 0, 0)),             # init
        ],
        out_specs=pl.BlockSpec((1, B, PAD), lambda h: (h, 0, 0)),
        compiler_params=pltpu.CompilerParams(
            dimension_semantics=("parallel",)),
    )(xf, params["w1a"], params["w1b"], params["w2"], params["wdec"],
      params["b1"], params["b2"], params["bdec"], params["init"])


# --------------------------------------------------------------------------
# Parameter construction (deterministic, in-script)
# --------------------------------------------------------------------------

def _rand(key, shape):
    scale = 1.0 / np.sqrt(shape[0])
    return jax.random.uniform(key, shape, jnp.float32, -scale, scale)


def _head_weights(key, out_dims):
    """Per-head weights in the 128-padded layout (pad rows/cols zeroed)."""
    used = int(sum(out_dims))
    ks = jax.random.split(key, 7)
    w1a = _rand(ks[0], (FEAT_DIM, HIDDEN))
    w1b = jnp.zeros((PAD, HIDDEN), jnp.float32).at[:used].set(
        _rand(ks[1], (used, HIDDEN)))
    b1 = _rand(ks[2], (1, HIDDEN))
    w2 = _rand(ks[3], (HIDDEN, HIDDEN))
    b2 = _rand(ks[4], (1, HIDDEN))
    wdec = jnp.zeros((HIDDEN, PAD), jnp.float32).at[:, :used].set(
        _rand(ks[5], (HIDDEN, used)))
    bdec = jnp.zeros((1, PAD), jnp.float32).at[:, :used].set(
        _rand(ks[6], (1, used)))
    return (w1a, w1b, b1, w2, b2, wdec, bdec)


def init_params(key):
    keys = jax.random.split(key, 8)
    p = {}

    # Backbone stem: PATCHxPATCH patch-conv as matmul (3*8*8=192 -> FEAT_DIM).
    # TODO(synk): full resnet50/ViT backbone not reproduced; conv stem stand-in.
    p["stem_w"] = _rand(keys[0], (3 * PATCH * PATCH, FEAT_DIM))
    p["stem_b"] = _rand(keys[1], (1, FEAT_DIM))

    hr = _head_weights(keys[2], HAND_DIMS)
    hl = _head_weights(keys[3], HAND_DIMS)
    ho = _head_weights(keys[4], OBJ_DIMS)
    for i, name in enumerate(("w1a", "w1b", "b1", "w2", "b2", "wdec", "bdec")):
        p[name] = jnp.stack([hr[i], hl[i], ho[i]])      # (3, ...)

    # Iterative-regression initial estimates, in the padded state layout.
    ident6d = jnp.tile(jnp.array([1, 0, 0, 0, 1, 0], jnp.float32), (16,))
    init_cam = jnp.array([0.9, 0.0, 0.0], jnp.float32)
    hand_init = (jnp.zeros((PAD,), jnp.float32)
                 .at[:NPOSE].set(ident6d)
                 .at[NPOSE + 10:NPOSE + 13].set(init_cam))
    obj_init = jnp.zeros((PAD,), jnp.float32).at[4:7].set(init_cam)
    p["init"] = jnp.stack([hand_init, hand_init, obj_init])[:, None, :]  # (3,1,128)
    p["init_cam"] = init_cam[None, :]                                    # (1, 3)
    return p


# --------------------------------------------------------------------------
# Small glue (plain JAX)
# --------------------------------------------------------------------------

def rot6d_to_rotmat(x):
    """(B, 96) rot6d -> (B, 16, 3, 3) rotation matrices."""
    B = x.shape[0]
    x = x.reshape(-1, 3, 2)
    a1, a2 = x[:, :, 0], x[:, :, 1]
    b1 = a1 / (jnp.linalg.norm(a1, axis=1, keepdims=True) + 1e-8)
    b2 = a2 - jnp.sum(b1 * a2, axis=1, keepdims=True) * b1
    b2 = b2 / (jnp.linalg.norm(b2, axis=1, keepdims=True) + 1e-8)
    b3 = jnp.cross(b1, b2)
    rotmat = jnp.stack([b1, b2, b3], axis=-1)
    return rotmat.reshape(B, 16, 3, 3)


def weak_persp_to_cam_t(cam_wp, focal_length, img_res):
    """(s, tx, ty) weak perspective -> full translation (tx, ty, tz)."""
    s, tx, ty = cam_wp[:, 0], cam_wp[:, 1], cam_wp[:, 2]
    tz = 2.0 * focal_length / (img_res * s + 1e-9)
    return jnp.stack([tx, ty, tz], axis=1)


def arctic_sf_forward(params, images, K, focal_length, img_res):
    B = images.shape[0]

    # ---- backbone + feat_vec (fused) -----------------------------------
    feat_vec, hw = backbone_feat_vec(params, images)    # (B, FEAT_DIM): spatial SUM
    xf = feat_vec / float(hw)                           # heads use avgpool (mean)

    # ---- all HMR heads in one kernel ------------------------------------
    heads = run_heads(params, xf)                       # (3, B, 128)

    pose_r = heads[0, :, :NPOSE]
    shape_r = heads[0, :, NPOSE:NPOSE + 10]
    cam_r = heads[0, :, NPOSE + 10:NPOSE + 13]
    pose_l = heads[1, :, :NPOSE]
    shape_l = heads[1, :, NPOSE:NPOSE + 10]
    cam_l = heads[1, :, NPOSE + 10:NPOSE + 13]
    rot_o = heads[2, :, :3]
    radian_o = heads[2, :, 3:4]
    cam_o = heads[2, :, 4:7]

    cam_init = jnp.tile(params["init_cam"], (B, 1))     # (B, 3)

    rotmat_r = rot6d_to_rotmat(pose_r)
    rotmat_l = rot6d_to_rotmat(pose_l)

    # ---- MANO / articulation heads --------------------------------------
    # TODO(synk): MANOHead LBS and ArtiHead object meshes require external MANO
    # / template assets; only camera translations are computed here (K unused).
    cam_t_r = weak_persp_to_cam_t(cam_r, focal_length, img_res)
    cam_t_l = weak_persp_to_cam_t(cam_l, focal_length, img_res)
    cam_t_o = weak_persp_to_cam_t(cam_o, focal_length, img_res)

    output = {
        "mano.pose.r": rotmat_r,
        "mano.beta.r": shape_r,
        "mano.cam_t.wp.r": cam_r,
        "mano.cam_t.r": cam_t_r,
        "mano.cam_t.wp.init.r": cam_init,
        "mano.pose.l": rotmat_l,
        "mano.beta.l": shape_l,
        "mano.cam_t.wp.l": cam_l,
        "mano.cam_t.l": cam_t_l,
        "mano.cam_t.wp.init.l": cam_init,
        "object.rot": rot_o,
        "object.radian": radian_o,
        "object.cam_t.wp": cam_o,
        "object.cam_t": cam_t_o,
        "object.cam_t.wp.init": cam_init,
        "feat_vec": feat_vec,
    }
    return output


# --------------------------------------------------------------------------
# Main
# --------------------------------------------------------------------------

if __name__ == "__main__":
    key = jax.random.PRNGKey(0)
    k_img, k_params = jax.random.split(key)

    B = 2
    img_res = 64
    focal_length = 1000.0

    # PyTorch-convention NCHW input images.
    images = jax.random.normal(k_img, (B, 3, img_res, img_res), jnp.float32)
    # Camera intrinsics (meta_info['intrinsics']); query_names is a string list
    # in the original module and has no numeric role here.
    K = jnp.tile(
        jnp.array([[focal_length, 0.0, img_res / 2.0],
                   [0.0, focal_length, img_res / 2.0],
                   [0.0, 0.0, 1.0]], jnp.float32)[None], (B, 1, 1))

    params = init_params(k_params)
    out = arctic_sf_forward(params, images, K, focal_length, img_res)
    out = jax.tree_util.tree_map(jax.block_until_ready, out)

    # light sanity checks
    assert out["feat_vec"].shape == (B, FEAT_DIM)
    assert out["mano.pose.r"].shape == (B, 16, 3, 3)
    assert out["mano.beta.l"].shape == (B, 10)
    assert out["object.radian"].shape == (B, 1)
    assert out["object.cam_t"].shape == (B, 3)
    assert bool(jnp.all(jnp.isfinite(out["mano.cam_t.r"])))
    print("KERNEL_OK")
</pallas_src>

<mosaic_0001>
module attributes {stable_mosaic.version = 11 : i64} {
  func.func @_stem_featvec_kernel(%arg0: i32, %arg1: i32, %arg2: memref<1x32x192xbf16, #tpu.memory_space<vmem>>, %arg3: memref<192x128xbf16, #tpu.memory_space<vmem>>, %arg4: memref<1x128xf32, #tpu.memory_space<vmem>>, %arg5: memref<1x1x128xf32, #tpu.memory_space<vmem>>) attributes {dimension_semantics = [#tpu.dimension_semantics<parallel>, #tpu.dimension_semantics<arbitrary>], iteration_bounds = array<i64: 2, 2>, scalar_prefetch = 0 : i64, scratch_operands = 0 : i64, tpu.core_type = #tpu.core_type<tc>, window_params = [{transform_indices = @transform_0, window_bounds = array<i64: 1, 32, 192>}, {pipeline_mode = #tpu.pipeline_mode<synchronous>, transform_indices = @transform_1, window_bounds = array<i64: 192, 128>}, {pipeline_mode = #tpu.pipeline_mode<synchronous>, transform_indices = @transform_2, window_bounds = array<i64: 1, 128>}, {transform_indices = @transform_3, window_bounds = array<i64: 1, 1, 128>}]} {
    %c0_i32 = arith.constant 0 : i32
    %0 = arith.cmpi eq, %arg1, %c0_i32 : i32
    %1 = arith.extui %0 : i1 to i32
    %c0_i32_0 = arith.constant 0 : i32
    %2 = arith.cmpi ne, %1, %c0_i32_0 : i32
    scf.if %2 {
      %cst_15 = arith.constant 0.000000e+00 : f32
      %18 = vector.broadcast %cst_15 : f32 to vector<1x1x128xf32>
      %c0_16 = arith.constant 0 : index
      %c0_17 = arith.constant 0 : index
      %c0_18 = arith.constant 0 : index
      %19 = vector.load %arg5[%c0_16, %c0_17, %c0_18] : memref<1x1x128xf32, #tpu.memory_space<vmem>>, vector<1x1x128xf32>
      tpu.vector_store %arg5[%c0_16, %c0_17, %c0_18], %18 {strides = array<i32>} : memref<1x1x128xf32, #tpu.memory_space<vmem>>, vector<1x1x128xf32>,
    } else {
    }
    %c0 = arith.constant 0 : index
    %c0_1 = arith.constant 0 : index
    %c0_2 = arith.constant 0 : index
    %3 = vector.load %arg2[%c0, %c0_1, %c0_2] : memref<1x32x192xbf16, #tpu.memory_space<vmem>>, vector<1x32x192xbf16>
    %4 = vector.shape_cast %3 : vector<1x32x192xbf16> to vector<32x192xbf16>
    %c0_3 = arith.constant 0 : index
    %c0_4 = arith.constant 0 : index
    %5 = vector.load %arg3[%c0_3, %c0_4] : memref<192x128xbf16, #tpu.memory_space<vmem>>, vector<192x128xbf16>
    %cst = arith.constant dense<0.000000e+00> : vector<32x128xf32>
    %6 = tpu.matmul %4, %5, %cst {dimension_numbers = #tpu.dot_dimension_numbers<[1], [0], [0], [1], [0, 0, 1, 1], [], []>} : vector<32x192xbf16>, vector<192x128xbf16>, vector<32x128xf32> -> vector<32x128xf32>
    %c0_5 = arith.constant 0 : index
    %c0_6 = arith.constant 0 : index
    %7 = vector.load %arg4[%c0_5, %c0_6] : memref<1x128xf32, #tpu.memory_space<vmem>>, vector<1x128xf32>
    %8 = vector.broadcast %7 : vector<1x128xf32> to vector<32x128xf32>
    %9 = arith.addf %6, %8 : vector<32x128xf32>
    %cst_7 = arith.constant 0.000000e+00 : f32
    %10 = vector.broadcast %cst_7 : f32 to vector<32x128xf32>
    %11 = arith.maximumf %9, %10 : vector<32x128xf32>
    %cst_8 = arith.constant dense<0.000000e+00> : vector<128xf32>
    %12 = vector.multi_reduction <add>, %11, %cst_8 [0] : vector<32x128xf32> to vector<128xf32>
    %13 = vector.shape_cast %12 : vector<128xf32> to vector<1x128xf32>
    %c0_9 = arith.constant 0 : index
    %c0_10 = arith.constant 0 : index
    %c0_11 = arith.constant 0 : index
    %14 = vector.load %arg5[%c0_9, %c0_10, %c0_11] : memref<1x1x128xf32, #tpu.memory_space<vmem>>, vector<1x1x128xf32>
    %15 = vector.shape_cast %13 : vector<1x128xf32> to vector<1x1x128xf32>
    %16 = arith.addf %14, %15 : vector<1x1x128xf32>
    %c0_12 = arith.constant 0 : index
    %c0_13 = arith.constant 0 : index
    %c0_14 = arith.constant 0 : index
    %17 = vector.load %arg5[%c0_12, %c0_13, %c0_14] : memref<1x1x128xf32, #tpu.memory_space<vmem>>, vector<1x1x128xf32>
    tpu.vector_store %arg5[%c0_12, %c0_13, %c0_14], %16 {strides = array<i32>} : memref<1x1x128xf32, #tpu.memory_space<vmem>>, vector<1x1x128xf32>,
    return
  }
  func.func @transform_0(%arg0: i32, %arg1: i32) -> (i32, i32, i32) {
    %c0_i32 = arith.constant 0 : i32
    %c0_i32_0 = arith.constant 0 : i32
    return %arg0, %arg1, %c0_i32 : i32, i32, i32
  }
  func.func @transform_1(%arg0: i32, %arg1: i32) -> (i32, i32) {
    %c0_i32 = arith.constant 0 : i32
    %c0_i32_0 = arith.constant 0 : i32
    %c0_i32_1 = arith.constant 0 : i32
    return %c0_i32, %c0_i32_0 : i32, i32
  }
  func.func @transform_2(%arg0: i32, %arg1: i32) -> (i32, i32) {
    %c0_i32 = arith.constant 0 : i32
    %c0_i32_0 = arith.constant 0 : i32
    %c0_i32_1 = arith.constant 0 : i32
    return %c0_i32, %c0_i32_0 : i32, i32
  }
  func.func @transform_3(%arg0: i32, %arg1: i32) -> (i32, i32, i32) {
    %c0_i32 = arith.constant 0 : i32
    %c0_i32_0 = arith.constant 0 : i32
    %c0_i32_1 = arith.constant 0 : i32
    return %arg0, %c0_i32, %c0_i32_0 : i32, i32, i32
  }
}

</mosaic_0001>

<bundles_post_ra>
// kernel: tpu_custom_call.1
= control target key start
LH: loop header
LB: loop body
LE: loop exit
PB: predicated region body
PF: predicated region fallthrough
CT: control target
= control target key end

     0   :  { %s1221_s0 = inlined_call_operand.hbm [shape: bf16[2,64,192], index: 0, kind: input, shape index: {}]   ;;  %s1222_s1 = inlined_call_operand.hbm [shape: bf16[192,128], index: 1, kind: input, shape index: {}]   ;;  %s1223_s2 = inlined_call_operand.vmem [shape: f32[1,128], index: 2, kind: input, shape index: {}]   ;;  %s1224_s3 = inlined_call_operand.hbm [shape: f32[2,1,128], index: 3, kind: output, shape index: {}]  }
   0x1   :  { %1237 = sst [smem:[#allocation16_spill]] %s1222_s1 }
   0x2   :  { %1238 = sst [smem:[#allocation17_spill]] %s1224_s3 }
   0x3   :  { %8 = vsyncpa [#allocation3], 0 }
   0x4   :  { %10 = vsyncpa [#allocation3 + $0x1], 0 }
   0x5   :  { %11 = vsyncpa [#allocation6], 0 }
   0x6   :  { %12 = vsyncpa [#allocation4], 0 }
   0x7   :  { %14 = vsyncpa [#allocation4 + $0x1], 0  ;;  %s940_s12 = smov 0   ;;  %s942_s13 = smov 0  }
   0x8   :  { %s944_s14 = smov 0   ;;  %s946_s15 = smov 0  }
   0x9   :  { %s948_s16 = smov 0   ;;  %s950_s17 = smov 0  }
   0xa   :  { %s952_s18 = smov 0   ;;  %s954_s19 = smov 0  }
   0xb   :  { %s956_s20 = smov 0   ;;  %s958_s21 = smov 0  }
   0xc   :  { %s960_s22 = smov 0  }
   0xd LB: > { %1239 = sst [smem:[#allocation11_spill]] %s869_s12  ;;  %s527_s23 = sadd.s32 4294967295, %s909_s22   ;;  %s909_s22 = sphi %s960_s22, %s20_s22   ;;  %s905_s21 = sphi %s958_s21, %s1273_s21   ;;  %s901_s20 = sphi %s956_s20, %s1272_s20   ;;  %s897_s19 = sphi %s954_s19, %s1271_s19   ;;  %s893_s18 = sphi %s952_s18, %s1270_s18   ;;  %s889_s17 = sphi %s950_s17, %s1269_s17   ;;  %s885_s16 = sphi %s948_s16, %s1268_s16   ;;  %s881_s15 = sphi %s946_s15, %s1267_s15   ;;  %s877_s14 = sphi %s944_s14, %s1266_s14   ;;  %s873_s13 = sphi %s942_s13, %s1265_s13   ;;  %s869_s12 = sphi %s940_s12, %s1264_s12  }
   0xe   : > { %s528_s24 = sadd.s32 4294967294, %s909_s22   ;;  %p54_p0 = scmp.ne.s32.totalorder %s885_s16, %s881_s15 }
   0xf   : > { %p996_p1 = scmp.eq.s32.totalorder %s527_s23, 0  ;;  %s109_s26 = sadd.s32 1, %s877_s14 }
  0x10   : > { %p119_p2 = scmp.ne.s32.totalorder %s877_s14, %s873_s13  ;;  %p120_p4 = scmp.eq.s32.totalorder %s527_s23, 3 }
  0x11   : > { %s1240_s25 = scalar_select %p996_p1, 1, 0 }
  0x12   : > { %p1005_p3 = por %p996_p1, %p54_p0  ;;  %p125_p5 = scmp.ne.s32.totalorder %s873_s13, %s869_s12 }
  0x13   : > { %p126_p6 = scmp.eq.s32.totalorder %s528_s24, 3  ;;  %p1011_p7 = por %p120_p4, %p119_p2 }
  0x14   : > { %s1241_s27 = scalar_select %p1005_p3, 1, 0 }
  0x15   : > { %s1242_s28 = scalar_select %p1011_p7, 1, 0 }
  0x16   : > { %p529_p8 = scmp.ge.s32.totalorder %s909_s22, 1  ;;  %p1016_p9 = por %p126_p6, %p125_p5 }
  0x17   : > { %1243 = sst [smem:[#allocation12_spill]] %s1242_s28  ;;  %p133_p10 = scmp.lt.s32.totalorder %s909_s22, 5 }
  0x18   : > { %s1244_s29 = scalar_select %p1016_p9, 1, 0 }
  0x19   : > { %p1021_p11 = pnand %p529_p8, %p133_p10  ;;  %s911_s4 = smov [#allocation5]  }
  0x1a   : > { %1245 = sst [smem:[#allocation13_spill]] %s1244_s29  ;;  %s145_s5 = sshll.u32 %s911_s4, 4  ;;  %s146_s5 = int_to_ptr.vmem [resolvable:$true] %s145_s5 }
  0x1b   : > { %s1246_s30 = scalar_select %p1021_p11, 1, 0 }
  0x1c   : > { %p596_p12 = pneg %p1021_p11  ;;  %s1248_s1 = sld [smem:[#allocation16_spill]] }
  0x1e   : > { %p1029_p13 = pnand %p596_p12, %p996_p1 }
  0x20   : > { %p727_p2 = pneg %p1029_p13 }
  0x22   : > { %s725_s9 = scalar_lea.hbm %s1248_s1, 1536 }
  0x23   : > { %p726_p0 = scmp.ne.s32.totalorder %s1248_s1, %s725_s9  ;;  %p732_p6 = scmp.lt.u32.totalorder %s725_s9, %s1248_s1 }
  0x25   : > { %p728_p4 = pnand %p727_p2, %p726_p0 }
  0x27   : > { %p729_p5 = pneg %p728_p4 }
  0x29   : > { %p734_p8 = pnand %p732_p6, %p729_p5 }
  0x2b   : > { %737 = shalt.err (!%p734_p8)
}
  0x2c   : > { %s738_s24 = scalar_lea.vmem %s146_s5, 1536  ;;  %p746_p7 = scmp.lt.s32.totalorder %s146_s5, %s146_s5 }
  0x2d   : > { %p739_p10 = scmp.ne.s32.totalorder %s146_s5, %s738_s24  ;;  %p747_p1 = scmp.lt.s32.totalorder %s738_s24, %s738_s24 }
  0x2f   : > { %p741_p12 = pnand %p739_p10, %p727_p2  ;;  %p748_p3 = por %p747_p1, %p746_p7 }
  0x31   : > { %p742_p9 = pneg %p741_p12 }
  0x33   : > { %p749_p11 = pnand %p748_p3, %p742_p9 }
  0x35   : > { %752 = shalt.err (!%p749_p11)
}
  0x36   : > { %s912_s4 = smov 64   ;;  %s913_s7 = smov 4  }
  0x37   : > { %599 = dma.hbm_to_vmem [thread:$0]  (!%p1029_p13), %s1248_s1, 1536, %s146_s5, [#allocation6], %s912_s4, %s912_s4, %s913_s7  }
  0x38   : > { %s29_s10 = sadd.s32 1, %s901_s20  ;;  %s32_s11 = sadd.s32 1, %s905_s21 }
  0x39   : > { %p30_p1 = scmp.ge.s32.totalorder %s29_s10, 2  ;;  %s41_s15 = sadd.s32 1, %s889_s17 }
  0x3a   : > { %p48_p3 = scmp.ne.s32.totalorder %s889_s17, %s885_s16  ;;  %p49_p7 = scmp.eq.s32.totalorder %s909_s22, 0 }
  0x3b   : > { %s1275_s10 = smov (%p30_p1, %s29_s10), 0  ;;  %s1277_s11 = smov (!%p30_p1, %s32_s11), %s905_s21 }
  0x3c   : > { %1249 = sst [smem:[#allocation14_spill]] %s1275_s10  ;;  %s37_s6 = ssub.s32 %s901_s20, %s1275_s10 }
  0x3d   : > { %p34_p9 = scmp.ge.s32.totalorder %s1277_s11, 2  ;;  %p609_p11 = scmp.lt.s32.totalorder %s909_s22, 4 }
  0x3e   : > { %p1061_p13 = por %p49_p7, %p48_p3  ;;  %s162_s23 = sand.u32 1, %s889_s17  }
  0x3f   : > { %s1279_s11 = smov (%p34_p9, %s1277_s11), 0  ;;  %s532_s24 = sshll.u32 %s162_s23, 5 }
  0x40   : > { %1251 = sst [smem:[#allocation15_spill]] %s1279_s11  ;;  %s36_s4 = ssub.s32 %s905_s21, %s1279_s11 }
  0x41   : > { %s38_s7 = sor.u32 %s37_s6, %s36_s4  ;;  %p107_p0 = scmp.eq.s32.totalorder %s36_s4, 0 }
  0x42   : > { %p39_p2 = scmp.eq.s32.totalorder %s38_s7, 0  ;;  %s563_s8 = sshll.u32 %s901_s20, 3 }
  0x43   : > { %s1074_s9 = scalar_select %p107_p0, %s877_s14, %s109_s26  }
  0x44   : > { %s1077_s1 = scalar_select %p39_p2, %s889_s17, %s41_s15  }
  0x45   : > { %s535_s10 = sshll.u32 %s905_s21, 4  ;;  %s166_s29 = scalar_lea.vmem [#allocation2], %s532_s24 }
  0x46   : > { %s176_s12 = sshll.u32 %s166_s29, 4  ;;  %s173_s3 = sadd.s32 %s563_s8, %s535_s10  ;;  %s1080_s12 = int_to_ptr.vmem [resolvable:$true] %s176_s12 }
  0x47   : > { %s536_s28 = sshll.u32 %s173_s3, 6  ;;  %p1086_p4 = pnand %p609_p11, %p1061_p13 }
  0x48   : > { %s1093_s26 = scalar_lea.hbm %s1221_s0, %s536_s28  ;;  %s1095_s29 = scalar_lea.sflag [#allocation3], %s162_s23 }
  0x49   : > { %s753_s3 = scalar_lea.hbm %s1093_s26, 512  ;;  %p755_p6 = pneg %p1086_p4 }
  0x4a   : > { %p754_p5 = scmp.ne.s32.totalorder %s1093_s26, %s753_s3  ;;  %s758_s5 = scalar_lea.hbm %s1221_s0, 2048 }
  0x4b   : > { %p759_p12 = scmp.lt.u32.totalorder %s1093_s26, %s1221_s0  ;;  %p760_p1 = scmp.lt.u32.totalorder %s758_s5, %s753_s3 }
  0x4c   : > { %p756_p8 = pnand %p755_p6, %p754_p5  ;;  %p762_p7 = scmp.lt.u32.totalorder %s753_s3, %s1093_s26 }
  0x4d   : > { %p761_p3 = por %p760_p1, %p759_p12 }
  0x4e   : > { %p757_p10 = pneg %p756_p8 }
  0x4f   : > { %p763_p9 = por %p762_p7, %p761_p3 }
  0x51   : > { %p764_p11 = pnand %p763_p9, %p757_p10 }
  0x53   : > { %767 = shalt.err (!%p764_p11)
}
  0x54   : > { %s768_s23 = scalar_lea.vmem %s1080_s12, 512  ;;  %s914_s7 = smov [#allocation2]  }
  0x55   : > { %p769_p13 = scmp.ne.s32.totalorder %s1080_s12, %s768_s23  ;;  %s773_s8 = sshll.u32 %s914_s7, 4  ;;  %s774_s8 = int_to_ptr.vmem [resolvable:$false] %s773_s8 }
  0x56   : > { %s775_s6 = scalar_lea.vmem %s774_s8, 1024  ;;  %p776_p5 = scmp.lt.s32.totalorder %s1080_s12, %s774_s8 }
  0x57   : > { %p771_p0 = pnand %p769_p13, %p755_p6  ;;  %p777_p8 = scmp.lt.s32.totalorder %s775_s6, %s768_s23 }
  0x59   : > { %p772_p2 = pneg %p771_p0  ;;  %p778_p12 = por %p777_p8, %p776_p5 }
  0x5b   : > { %p779_p1 = pnand %p778_p12, %p772_p2 }
  0x5d   : > { %782 = shalt.err (!%p779_p1)
}
  0x5e   : > { %s915_s4 = smov 128   ;;  %s916_s3 = smov 8  }
  0x5f   : > { %603 = dma.hbm_to_vmem [thread:$0]  (!%p1086_p4), %s1093_s26, 512, %s1080_s12, %s1095_s29, %s915_s4, %s915_s4, %s916_s3  }
  0x60   : > { %p1253_p6 = scmp.ne.s32.totalorder %s1246_s30, 0 }
  0x61   : > { %s190_s10 = sand.u32 (!%p1253_p6), 1, %s885_s16   ;;  %p1254_p10 = scmp.ne.s32.totalorder (!%p1253_p6), %s1241_s27, 0 }
  0x62   : > { %188 = sbr.rel (%p1253_p6) target bundleno = 419 (0x1a3), region = 32  ;;  %s538_s15 = sshll.u32 (!%p1253_p6), %s190_s10, 5 }
  0x63   : > { %s191_s5 = scalar_lea.sflag (!%p1253_p6), [#allocation3], %s190_s10  ;;  %s1126_s28 = scalar_lea.vmem (!%p1253_p6), [#allocation2], %s538_s15 }
  0x69   : > { %856 = dma.done.wait (%p1254_p10), %s191_s5, 512  }
  0x6a   : > { %858 = vsyncadd (%p1254_p10), %s191_s5, 4294966784  ;;  %p1255_p3 = scmp.ne.s32.totalorder %s1240_s25, 0 }
  0x6c   : > { %860 = dma.done.wait (%p1255_p3), [#allocation6], 1536  }
  0x6d   : > { %862 = vsyncadd (%p1255_p3), [#allocation6], 4294965760  ;;  %s218_s12 = sand.u32 1, %s873_s13   ;;  %p540_p4 = scmp.ne.s32.totalorder %s893_s18, 0 }
  0x6e   : > { %s1139_s30 = scalar_lea.vmem [#allocation7], %s218_s12  ;;  %v917_v0 = vmov (!%p540_p4), 0.0  }
  0x6f   : > { %225 = sbr.rel (%p540_p4) target bundleno = 118 (0x76), region = 44  ;;  %226 = vst [vmem:[%s1139_s30] sm:$0x1] (!%p540_p4), %v917_v0 }
  0x76 PF: > { %v707_v1 = vld [vmem:[#allocation5] sm:$0xff]   ;;  %v918_v2 = vmov 0   ;;  %v708_v3 = vld [vmem:[#allocation5 + $0x8] sm:$0xff]   ;;  %v709_v4 = vld [vmem:[#allocation5 + $0x10] sm:$0xff]   ;;  %vm352_vm0 = vcmask 523264   ;;  %s1256_s27 = sld [smem:[#allocation12_spill]] }
  0x77   : > { %359 = vmatprep.subr.bf16.mxu0 %v918_v2  ;;  %564 = vmatprep.subr.bf16.mxu1 %v918_v2  ;;  %v710_v5 = vld [vmem:[#allocation5 + $0x18] sm:$0xff]   ;;  %v721_v6 = vld [vmem:[%s1126_s28 + $0x4] ss:$8 sps:$4 sm:$0xff]   ;;  %v713_v10 = vld [vmem:[#allocation5 + $0x30] sm:$0xff]   ;;  %s560_s11 = sshll.u32 %s897_s19, 4  ;;  %s437_s26 = sshll.u32 %s1139_s30, 4  ;;  %s1158_s26 = int_to_ptr.vmem [resolvable:$true] %s437_s26 }
  0x78   : > { %360 = vmatpush1.bf16.msra.mxu0 %v707_v1  ;;  %576 = vmatpush1.bf16.msra.mxu1 %v707_v1  ;;  %v711_v7 = vld [vmem:[#allocation5 + $0x20] sm:$0xff]   ;;  %v724_v8 = vld [vmem:[%s1126_s28 + $0x14] ss:$8 sps:$4 sm:$0xff]   ;;  %v712_v9 = vld [vmem:[#allocation5 + $0x28] sm:$0xff]   ;;  %s1257_s23 = sld [smem:[#allocation17_spill]]  ;;  %s425_s8 = scalar_lea.sflag [#allocation4], %s218_s12 }
  0x79   : > { %361 = vmatprep.subr.bf16.mxu0 %v918_v2  ;;  %565 = vmatprep.subr.bf16.mxu1 %v918_v2  ;;  %v714_v11 = vld [vmem:[#allocation5 + $0x38] sm:$0xff]   ;;  %v715_v12 = vld [vmem:[#allocation5 + $0x40] sm:$0xff]   ;;  %v716_v13 = vld [vmem:[#allocation5 + $0x48] sm:$0xff]   ;;  %s783_s6 = scalar_lea.vmem %s1158_s26, 16  ;;  %s919_s19 = smov [#allocation7]  }
  0x7a   : > { %558 = vmatprep.mubr.msk.bf16.mxu0 %vm352_vm0, %v721_v6  ;;  %559 = vmatprep.mubr.msk.bf16.mxu1 %vm352_vm0, %v724_v8  ;;  %v717_v14 = vld [vmem:[#allocation5 + $0x50] sm:$0xff]   ;;  %v718_v15 = vld [vmem:[#allocation5 + $0x58] sm:$0xff]   ;;  %v719_v16 = vld [vmem:[%s1126_s28] ss:$8 sps:$4 sm:$0xff]   ;;  %p784_p7 = scmp.ne.s32.totalorder %s1158_s26, %s783_s6  ;;  %s787_s4 = sshll.u32 %s919_s19, 4  ;;  %s788_s4 = int_to_ptr.vmem [resolvable:$false] %s787_s4 }
  0x7b   : > { %v722_v17 = vld [vmem:[%s1126_s28 + $0x10] ss:$8 sps:$4 sm:$0xff]   ;;  %v541_v18 = vld [vmem:[%s1223_s2] ss:$0 sm:$0xff]  ;;  %s789_s3 = scalar_lea.vmem %s788_s4, 32  ;;  %p790_p0 = scmp.lt.s32.totalorder %s1158_s26, %s788_s4 }
  0x7c   : > { %362 = vmatpush1.bf16.msra.mxu0 %v708_v3  ;;  %577 = vmatpush1.bf16.msra.mxu1 %v708_v3  ;;  %v421_v43 = vld [vmem:[%s1139_s30] sm:$0x1]  ;;  %p1258_p9 = scmp.ne.s32.totalorder %s1256_s27, 0  ;;  %p791_p2 = scmp.lt.s32.totalorder %s789_s3, %s783_s6 }
  0x7d   : > { %363 = vmatprep.subr.bf16.mxu0 %v918_v2  ;;  %566 = vmatprep.subr.bf16.mxu1 %v918_v2 }
  0x7e   : > { %s1156_s7 = scalar_lea.hbm %s1257_s23, %s560_s11  ;;  %p785_p11 = pnand %p784_p7, %p1258_p9 }
  0x7f   : > { %p792_p5 = por %p791_p2, %p790_p0 }
  0x80   : > { %364 = vmatpush1.bf16.msra.mxu0 %v709_v4  ;;  %578 = vmatpush1.bf16.msra.mxu1 %v709_v4  ;;  %p786_p13 = pneg %p785_p11 }
  0x81   : > { %365 = vmatprep.subr.bf16.mxu0 %v918_v2  ;;  %567 = vmatprep.subr.bf16.mxu1 %v918_v2 }
  0x82   : > { %p793_p8 = pnand %p792_p5, %p786_p13 }
  0x84   : > { %366 = vmatpush1.bf16.msra.mxu0 %v710_v5  ;;  %579 = vmatpush1.bf16.msra.mxu1 %v710_v5 }
  0x85   : > { %367 = vmatprep.subr.bf16.mxu0 %v918_v2  ;;  %568 = vmatprep.subr.bf16.mxu1 %v918_v2 }
  0x88   : > { %368 = vmatpush1.bf16.msra.mxu0 %v711_v7  ;;  %580 = vmatpush1.bf16.msra.mxu1 %v711_v7 }
  0x89   : > { %369 = vmatprep.subr.bf16.mxu0 %v918_v2  ;;  %569 = vmatprep.subr.bf16.mxu1 %v918_v2 }
  0x8c   : > { %370 = vmatpush1.bf16.msra.mxu0 %v712_v9  ;;  %581 = vmatpush1.bf16.msra.mxu1 %v712_v9 }
  0x8d   : > { %371 = vmatprep.subr.bf16.mxu0 %v918_v2  ;;  %570 = vmatprep.subr.bf16.mxu1 %v918_v2 }
  0x90   : > { %372 = vmatpush1.bf16.msra.mxu0 %v713_v10  ;;  %582 = vmatpush1.bf16.msra.mxu1 %v713_v10 }
  0x91   : > { %373 = vmatprep.subr.bf16.mxu0 %v918_v2  ;;  %571 = vmatprep.subr.bf16.mxu1 %v918_v2 }
  0x94   : > { %374 = vmatpush1.bf16.msra.mxu0 %v714_v11  ;;  %583 = vmatpush1.bf16.msra.mxu1 %v714_v11 }
  0x95   : > { %375 = vmatprep.subr.bf16.mxu0 %v918_v2  ;;  %572 = vmatprep.subr.bf16.mxu1 %v918_v2 }
  0x98   : > { %376 = vmatpush1.bf16.msra.mxu0 %v715_v12  ;;  %584 = vmatpush1.bf16.msra.mxu1 %v715_v12 }
  0x99   : > { %377 = vmatprep.subr.bf16.mxu0 %v918_v2  ;;  %573 = vmatprep.subr.bf16.mxu1 %v918_v2 }
  0x9c   : > { %378 = vmatpush1.bf16.msra.mxu0 %v716_v13  ;;  %585 = vmatpush1.bf16.msra.mxu1 %v716_v13 }
  0x9d   : > { %379 = vmatprep.subr.bf16.mxu0 %v918_v2  ;;  %574 = vmatprep.subr.bf16.mxu1 %v918_v2 }
  0xa0   : > { %380 = vmatpush1.bf16.msra.mxu0 %v717_v14  ;;  %586 = vmatpush1.bf16.msra.mxu1 %v717_v14 }
  0xa1   : > { %381 = vmatprep.subr.bf16.mxu0 %v918_v2  ;;  %575 = vmatprep.subr.bf16.mxu1 %v918_v2 }
  0xa4   : > { %382 = vmatpush1.bf16.msra.mxu0 %v718_v15  ;;  %587 = vmatpush1.bf16.msra.mxu1 %v718_v15 }
  0xa7   : > { %392 = vmatmul.mubr.bf16.vlgmr.msra.gmra.mrb[0].mxu0 %v719_v16  ;;  %400 = vmatmul.mubr.bf16.vlgmr.msra.gmra.mrb[0].mxu1 %v722_v17 }
 0x17a   : > { %v393_v19 = vpop.f32.mrb[0].mxu0  ;;  %v401_v20 = vpop.f32.mrb[0].mxu1 }
 0x17b   : > { %v394_v21 = vadd.f32 %v541_v18, %v393_v19  ;;  %v395_v22 = vpop.f32.mrb[1].mxu0  ;;  %v402_v23 = vadd.f32 %v541_v18, %v401_v20  ;;  %v403_v24 = vpop.f32.mrb[1].mxu1 }
 0x17c   : > { %v396_v25 = vpop.f32.mrb[2].mxu0  ;;  %v404_v26 = vpop.f32.mrb[2].mxu1 }
 0x17d   : > { %v397_v27 = vadd.f32 %v541_v18, %v396_v25  ;;  %v398_v28 = vpop.f32.mrb[3].mxu0  ;;  %v406_v29 = vpop.f32.mrb[3].mxu1  ;;  %v408_v30 = vmax.f32 %v394_v21, 0.0  ;;  %v410_v31 = vmax.f32 %v402_v23, 0.0  ;;  %v405_v33 = vadd.f32 %v541_v18, %v404_v26 }
 0x17f   : > { %v409_v32 = vmax.f32 %v397_v27, 0.0  ;;  %v411_v35 = vmax.f32 %v405_v33, 0.0 }
 0x181   : > { %v412_v34 = vadd.f32 %v409_v32, %v408_v30 }
 0x183   : > { %v413_v36 = vadd.f32 %v412_v34, %v410_v31 }
 0x185   : > { %v414_v37 = vadd.f32 %v413_v36, %v411_v35 }
 0x187   : > { %v415_v38 = vrot.slane %v414_v37, 4 }
 0x189   : > { %v416_v39 = vadd.f32 %v415_v38, %v414_v37 }
 0x18b   : > { %v417_v40 = vrot.slane %v416_v39, 2 }
 0x18d   : > { %v418_v41 = vadd.f32 %v417_v40, %v416_v39 }
 0x18f   : > { %v419_v42 = vrot.slane %v418_v41, 1 }
 0x191   : > { %v420_v44 = vadd.f32 %v419_v42, %v418_v41 }
 0x193   : > { %v422_v45 = vadd.f32 %v421_v43, %v420_v44 }
 0x195   : > { %423 = vst [vmem:[%s1139_s30] sm:$0x1] %v422_v45 }
 0x196   : > { %796 = shalt.err (!%p793_p8)
}
 0x197   : > { %s797_s10 = scalar_lea.hbm %s1156_s7, 16  ;;  %s801_s28 = scalar_lea.hbm %s1257_s23, 32 }
 0x198   : > { %p798_p12 = scmp.ne.s32.totalorder %s1156_s7, %s797_s10  ;;  %p802_p10 = scmp.lt.u32.totalorder %s1156_s7, %s1257_s23 }
 0x199   : > { %p803_p3 = scmp.lt.u32.totalorder %s801_s28, %s797_s10  ;;  %p805_p7 = scmp.lt.u32.totalorder %s797_s10, %s1156_s7 }
 0x19a   : > { %p799_p1 = pnand %p798_p12, %p1258_p9 }
 0x19b   : > { %p804_p4 = por %p803_p3, %p802_p10 }
 0x19c   : > { %p800_p6 = pneg %p799_p1 }
 0x19d   : > { %p806_p11 = por %p805_p7, %p804_p4 }
 0x19f   : > { %p807_p13 = pnand %p806_p11, %p800_p6 }
 0x1a1   : > { %810 = shalt.err (!%p807_p13)
}
 0x1a2   : > { %594 = dma.vmem_to_hbm [thread:$0]  (%p1258_p9), %s1158_s26, 16, %s1156_s7, %s425_s8  }
 0x1a3 PF: > { %s1259_s18 = sld [smem:[#allocation11_spill]]  ;;  %s1260_s25 = sld [smem:[#allocation13_spill]] }
 0x1a4   : > { %p611_p0 = scmp.ge.s32.totalorder %s909_s22, 2 }
 0x1a9   : > { %s449_s11 = sand.u32 1, %s1259_s18   ;;  %p1261_p2 = scmp.ne.s32.totalorder %s1260_s25, 0 }
 0x1aa   : > { %s450_s29 = scalar_lea.sflag [#allocation4], %s449_s11 }
 0x1ab   : > { %p605_p5 = pnand %p611_p0, %p1261_p2 }
 0x1ad   : > { %864 = dma.done.wait (!%p605_p5), %s450_s29, 16  }
 0x1ae   : > { %866 = vsyncadd (!%p605_p5), %s450_s29, 4294967280  ;;  %s20_s22 = sadd.s32 1, %s909_s22   ;;  %s1262_s27 = sld [smem:[#allocation14_spill]] }
 0x1af   : > { %p17_p8 = scmp.ge.s32.totalorder %s20_s22, 6   ;;  %s1263_s26 = sld [smem:[#allocation15_spill]] }
 0x1b0   : > { %s1264_s12 = smov %s873_s13  ;;  %s1265_s13 = smov %s877_s14 }
 0x1b1   : > { %s1266_s14 = smov %s1074_s9  ;;  %s1267_s15 = smov %s885_s16 }
 0x1b2   : > { %s1268_s16 = smov %s889_s17  ;;  %s1269_s17 = smov %s1077_s1 }
 0x1b3   : > { %s1270_s18 = smov %s901_s20  ;;  %s1271_s19 = smov %s905_s21 }
 0x1b4   : > { %s1272_s20 = smov %s1262_s27  ;;  %19 = sbr.rel (!%p17_p8) target bundleno = 13 (0xd), region = 85 }
 0x1b5   : > { %s1273_s21 = smov %s1263_s26 }
 0x1bb   :  { %454 = vsyncpa [#allocation3], 1 }
 0x1bc   :  { %456 = vsyncpa [#allocation3 + $0x1], 1 }
 0x1bd   :  { %457 = vsyncpa [#allocation6], 1 }
 0x1be   :  { %458 = vsyncpa [#allocation4], 1 }
 0x1bf   :  { %460 = vsyncpa [#allocation4 + $0x1], 1 }

</bundles_post_ra>
